<compile_context>
chip_gen: v7x
topology: tpu7x:2x2x1
jax: 0.10.0
libtpu: 0.0.40
codegen_flags: <defaults>
</compile_context>

<pallas_src>
import functools
import math

import jax
import jax.numpy as jnp
from jax import lax
from jax.experimental import pallas as pl
from jax.experimental.pallas import tpu as pltpu


def _round_up(x, m):
    return (x + m - 1) // m * m


def _asin_poly(a):
    # Cephes asinf-style polynomial for a in [0, 1]; ~1e-7 abs error in f32.
    # (jnp.arcsin has no guaranteed Mosaic lowering, so use VPU-only ops.)
    big = a > 0.5
    z_big = 0.5 * (1.0 - a)
    x_big = jnp.sqrt(z_big)
    z = jnp.where(big, z_big, a * a)
    x = jnp.where(big, x_big, a)
    p = ((((4.2163199048e-2 * z + 2.4181311049e-2) * z + 4.5470025998e-2) * z
          + 7.4953002686e-2) * z + 1.6666752422e-1) * z * x + x
    return jnp.where(big, jnp.float32(jnp.pi / 2) - 2.0 * p, p)


def _prompt_kernel(x_ref, en_ref, o_ref, acc_ref, *,
                   tiles_per_core, n_valid_rows, mask_padding,
                   negate, stop_val, mm_dtype):
    c = pl.program_id(0)          # core-split axis ("parallel")
    i = pl.program_id(1)          # N-tile reduction axis ("arbitrary")

    @pl.when(i == 0)
    def _init():
        acc_ref[...] = jnp.zeros_like(acc_ref)

    x_raw = x_ref[...]                                   # (tn, D), input dtype
    x_f32 = x_raw.astype(jnp.float32)
    tn, d = x_raw.shape

    # Per-row inverse norms laid out along LANES: ssq[0, n] = sum_d x[n, d]^2,
    # computed on the MXU so there is no XLU reduce over D and no relayout.
    sq = x_f32 * x_f32
    ones_row = jnp.ones((1, d), jnp.float32)
    ssq = lax.dot_general(ones_row, sq,
                          dimension_numbers=(((1,), (1,)), ((), ())),
                          preferred_element_type=jnp.float32)      # (1, tn)
    eps = jnp.float32(1e-12)
    inv_norm = lax.rsqrt(jnp.maximum(ssq, eps * eps))              # 1/max(||x||,eps)

    # Un-normalized cosine numerator on the raw tile (MXU starts immediately):
    # dot[m, n] = <en_m, x_n>  -> (M, tn); N on lanes, lane-dense epilogue.
    dot = lax.dot_general(en_ref[...], x_raw.astype(mm_dtype),
                          dimension_numbers=(((1,), (1,)), ((), ())),
                          preferred_element_type=jnp.float32)      # (M, tn)
    cos = dot * inv_norm

    # ||xn - en|| / 2 == sqrt(clamp(0.5 - 0.5*cos, 0, 1)) for unit-norm rows.
    half = jnp.sqrt(jnp.clip(0.5 - 0.5 * cos, 0.0, 1.0))
    dists = 2.0 * jnp.square(_asin_poly(half))                     # (M, tn)

    # Trace-time specialized epilogue (weight sign / stop are constants).
    if negate:
        dists = -dists
    if stop_val is not None:
        dists = jnp.maximum(dists, jnp.float32(stop_val))          # ReplaceGrad fwd

    if mask_padding:
        col = lax.broadcasted_iota(jnp.int32, (1, tn), 1)
        row = (c * tiles_per_core + i) * tn + col
        dists = jnp.where(row < n_valid_rows, dists, 0.0)

    # Vreg-shaped accumulation (pure VPU); single scalar reduction at the end.
    acc_ref[...] += dists

    @pl.when(i == pl.num_programs(1) - 1)
    def _finalize():
        o_ref[...] = jnp.sum(acc_ref[...], keepdims=True).reshape(1, 1, 1)


def prompt_forward(inp, embed, weight=1.0, stop=float("-inf"), *,
                   matmul_dtype=jnp.float32, tile_n=2048):
    """Forward of `Prompt`: inp (N, D), embed (M, D) -> f32 scalar.

    `weight` / `stop` are compile-time Python scalars (they are constant
    buffers in the PyTorch module), so the epilogue is specialized per config.
    """
    inp = jnp.asarray(inp)
    if inp.dtype != jnp.bfloat16:          # allow bf16 pass-through (halves HBM reads)
        inp = inp.astype(jnp.float32)
    embed = jnp.asarray(embed, jnp.float32)
    N, D = inp.shape
    M, D2 = embed.shape
    assert D == D2, (inp.shape, embed.shape)

    w = float(weight)
    stop_f = float(stop)

    # Hoisted constant-buffer preprocessing: normalize the prompt embedding
    # once outside the kernel; optionally down-cast it for the MXU.
    eps = jnp.float32(1e-12)
    e_ssq = jnp.sum(embed * embed, axis=-1, keepdims=True)
    en = (embed * lax.rsqrt(jnp.maximum(e_ssq, eps * eps))).astype(matmul_dtype)

    # Tile sizing: multiple of 16 rows (bf16-safe sublane packing), big enough
    # to amortize the ~0.35 us per-step overhead, double-buffered input capped
    # at ~20 MiB so it fits comfortably in v7x's 64 MiB VMEM.
    bytes_per_row = D * inp.dtype.itemsize
    vmem_cap_rows = max(16, ((20 * 1024 * 1024) // (2 * bytes_per_row)) // 16 * 16)
    tn = min(_round_up(min(tile_n, N), 16), vmem_cap_rows)

    num_tiles = -(-N // tn)
    # Split the N reduction over the 2 TensorCores on v7x (no-op on 1-TC chips).
    ncs = 2 if num_tiles >= 2 else 1
    tpc = -(-num_tiles // ncs)
    total_tiles = ncs * tpc
    n_pad = total_tiles * tn
    if n_pad != N:
        inp = jnp.pad(inp, ((0, n_pad - N), (0, 0)))

    kernel = functools.partial(
        _prompt_kernel,
        tiles_per_core=tpc,
        n_valid_rows=N,
        mask_padding=(n_pad != N),
        negate=(w < 0.0),
        stop_val=(None if stop_f == float("-inf") else stop_f),
        mm_dtype=matmul_dtype)

    partials = pl.pallas_call(
        kernel,
        out_shape=jax.ShapeDtypeStruct((ncs, 1, 1), jnp.float32),
        grid_spec=pltpu.PrefetchScalarGridSpec(
            num_scalar_prefetch=0,
            grid=(ncs, tpc),
            in_specs=[
                pl.BlockSpec((tn, D), lambda c, i: (c * tpc + i, 0)),  # input tile
                pl.BlockSpec((M, D), lambda c, i: (0, 0)),             # normalized embed
            ],
            out_specs=pl.BlockSpec((1, 1, 1), lambda c, i: (c, 0, 0)),
            scratch_shapes=[pltpu.VMEM((M, tn), jnp.float32)],          # vreg-shaped acc
        ),
        compiler_params=pltpu.CompilerParams(
            dimension_semantics=("parallel", "arbitrary"),
            vmem_limit_bytes=32 * 1024 * 1024,
        ),
    )(inp, en)

    return jnp.float32(abs(w)) * jnp.sum(partials) / jnp.float32(N * M)


def prompt_reference(inp, embed, weight=1.0, stop=float("-inf")):
    # Plain-JAX reference mirroring the PyTorch forward exactly.
    eps = 1e-12
    inp = jnp.asarray(inp, jnp.float32)
    embed = jnp.asarray(embed, jnp.float32)
    xn = inp / jnp.maximum(jnp.linalg.norm(inp, axis=-1, keepdims=True), eps)
    en = embed / jnp.maximum(jnp.linalg.norm(embed, axis=-1, keepdims=True), eps)
    d = jnp.linalg.norm(xn[:, None, :] - en[None, :, :], axis=-1) / 2.0
    d = 2.0 * jnp.arcsin(jnp.minimum(d, 1.0)) ** 2
    d = d * jnp.sign(jnp.float32(weight))
    return jnp.abs(jnp.float32(weight)) * jnp.mean(
        jnp.maximum(d, jnp.float32(stop)))


if __name__ == "__main__":
    key = jax.random.PRNGKey(0)
    k1, k2, k3, k4 = jax.random.split(key, 4)

    # Small shapes consistent with the module: N image-cutout embeddings vs
    # M prompt embeddings of dimension D.
    N, M, D = 8, 4, 32
    x = jax.random.normal(k1, (N, D), dtype=jnp.float32)
    e = jax.random.normal(k2, (M, D), dtype=jnp.float32)

    out = prompt_forward(x, e, 1.0, float("-inf"))
    jax.block_until_ready(out)
    ref = prompt_reference(x, e, 1.0, float("-inf"))
    assert jnp.allclose(out, ref, rtol=1e-4, atol=1e-5), (out, ref)

    # A case exercising the 2D grid (core split + multiple N tiles per core),
    # row padding/masking, negative weight and a finite `stop`.
    N2, M2, D2 = 300, 4, 64
    x2 = jax.random.normal(k3, (N2, D2), dtype=jnp.float32)
    e2 = jax.random.normal(k4, (M2, D2), dtype=jnp.float32)
    w2, s2 = -1.5, -2.0

    out2 = prompt_forward(x2, e2, w2, s2, tile_n=128)
    jax.block_until_ready(out2)
    ref2 = prompt_reference(x2, e2, w2, s2)
    assert jnp.allclose(out2, ref2, rtol=5e-4, atol=1e-5), (out2, ref2)

    # Default (large-tile) path on the same data.
    out2b = prompt_forward(x2, e2, w2, s2)
    jax.block_until_ready(out2b)
    assert jnp.allclose(out2b, ref2, rtol=5e-4, atol=1e-5), (out2b, ref2)

    # bf16 MXU operand fast path (f32 accumulation) -- looser tolerance.
    out3 = prompt_forward(x2, e2, w2, s2, matmul_dtype=jnp.bfloat16, tile_n=128)
    jax.block_until_ready(out3)
    assert jnp.allclose(out3, ref2, rtol=1e-2, atol=1e-3), (out3, ref2)

    # bf16 input pass-through (halves HBM traffic) -- looser tolerance.
    out4 = prompt_forward(x2.astype(jnp.bfloat16), e2, w2, s2, tile_n=128)
    jax.block_until_ready(out4)
    assert jnp.allclose(out4, ref2, rtol=1e-2, atol=1e-3), (out4, ref2)

    print("KERNEL_OK")
</pallas_src>

<mosaic_0001>
module attributes {stable_mosaic.version = 11 : i64} {
  func.func @_prompt_kernel(%arg0: i32, %arg1: i32, %arg2: memref<16x32xf32, #tpu.memory_space<vmem>>, %arg3: memref<4x32xf32, #tpu.memory_space<vmem>>, %arg4: memref<1x1x1xf32, #tpu.memory_space<vmem>>, %arg5: memref<4x16xf32, #tpu.memory_space<vmem>>) attributes {dimension_semantics = [#tpu.dimension_semantics<parallel>, #tpu.dimension_semantics<arbitrary>], iteration_bounds = array<i64: 1, 1>, scalar_prefetch = 0 : i64, scratch_operands = 1 : i64, tpu.core_type = #tpu.core_type<tc>, window_params = [{transform_indices = @transform_0, window_bounds = array<i64: 16, 32>}, {pipeline_mode = #tpu.pipeline_mode<synchronous>, transform_indices = @transform_1, window_bounds = array<i64: 4, 32>}, {transform_indices = @transform_2, window_bounds = array<i64: 1, 1, 1>}]} {
    %c0_i32 = arith.constant 0 : i32
    %0 = arith.cmpi eq, %arg1, %c0_i32 : i32
    %1 = arith.extui %0 : i1 to i32
    %c0_i32_0 = arith.constant 0 : i32
    %2 = arith.cmpi ne, %1, %c0_i32_0 : i32
    scf.if %2 {
      %cst_30 = arith.constant 0.000000e+00 : f32
      %76 = vector.broadcast %cst_30 : f32 to vector<4x16xf32>
      %c0_31 = arith.constant 0 : index
      %c0_32 = arith.constant 0 : index
      %77 = vector.load %arg5[%c0_31, %c0_32] : memref<4x16xf32, #tpu.memory_space<vmem>>, vector<4x16xf32>
      tpu.vector_store %arg5[%c0_31, %c0_32], %76 {strides = array<i32>} : memref<4x16xf32, #tpu.memory_space<vmem>>, vector<4x16xf32>,
    } else {
    }
    %c0 = arith.constant 0 : index
    %c0_1 = arith.constant 0 : index
    %3 = vector.load %arg2[%c0, %c0_1] : memref<16x32xf32, #tpu.memory_space<vmem>>, vector<16x32xf32>
    %4 = arith.mulf %3, %3 : vector<16x32xf32>
    %cst = arith.constant 1.000000e+00 : f32
    %5 = vector.broadcast %cst : f32 to vector<1x32xf32>
    %cst_2 = arith.constant dense<0.000000e+00> : vector<1x16xf32>
    %6 = tpu.matmul %5, %4, %cst_2 {dimension_numbers = #tpu.dot_dimension_numbers<[1], [1], [0], [0], [0, 0, 1, 0], [], []>} : vector<1x32xf32>, vector<16x32xf32>, vector<1x16xf32> -> vector<1x16xf32>
    %cst_3 = arith.constant 9.99999996E-13 : f32
    %cst_4 = arith.constant 9.99999996E-13 : f32
    %7 = arith.mulf %cst_3, %cst_4 : f32
    %8 = vector.broadcast %7 : f32 to vector<1x16xf32>
    %9 = arith.maximumf %6, %8 : vector<1x16xf32>
    %10 = math.rsqrt %9 : vector<1x16xf32>
    %c0_5 = arith.constant 0 : index
    %c0_6 = arith.constant 0 : index
    %11 = vector.load %arg3[%c0_5, %c0_6] : memref<4x32xf32, #tpu.memory_space<vmem>>, vector<4x32xf32>
    %cst_7 = arith.constant dense<0.000000e+00> : vector<4x16xf32>
    %12 = tpu.matmul %11, %3, %cst_7 {dimension_numbers = #tpu.dot_dimension_numbers<[1], [1], [0], [0], [0, 0, 1, 0], [], []>} : vector<4x32xf32>, vector<16x32xf32>, vector<4x16xf32> -> vector<4x16xf32>
    %13 = vector.broadcast %10 : vector<1x16xf32> to vector<4x16xf32>
    %14 = arith.mulf %12, %13 : vector<4x16xf32>
    %cst_8 = arith.constant 5.000000e-01 : f32
    %15 = vector.broadcast %cst_8 : f32 to vector<4x16xf32>
    %16 = arith.mulf %15, %14 : vector<4x16xf32>
    %cst_9 = arith.constant 5.000000e-01 : f32
    %17 = vector.broadcast %cst_9 : f32 to vector<4x16xf32>
    %18 = arith.subf %17, %16 : vector<4x16xf32>
    %cst_10 = arith.constant 0.000000e+00 : f32
    %cst_11 = arith.constant 1.000000e+00 : f32
    %19 = vector.broadcast %cst_10 : f32 to vector<4x16xf32>
    %20 = arith.maximumf %19, %18 : vector<4x16xf32>
    %21 = vector.broadcast %cst_11 : f32 to vector<4x16xf32>
    %22 = arith.minimumf %21, %20 : vector<4x16xf32>
    %23 = math.sqrt %22 : vector<4x16xf32>
    %cst_12 = arith.constant 5.000000e-01 : f32
    %24 = vector.broadcast %cst_12 : f32 to vector<4x16xf32>
    %25 = arith.cmpf ogt, %23, %24 : vector<4x16xf32>
    %cst_13 = arith.constant 1.000000e+00 : f32
    %26 = vector.broadcast %cst_13 : f32 to vector<4x16xf32>
    %27 = arith.subf %26, %23 : vector<4x16xf32>
    %cst_14 = arith.constant 5.000000e-01 : f32
    %28 = vector.broadcast %cst_14 : f32 to vector<4x16xf32>
    %29 = arith.mulf %28, %27 : vector<4x16xf32>
    %30 = math.sqrt %29 : vector<4x16xf32>
    %31 = arith.mulf %23, %23 : vector<4x16xf32>
    %32 = arith.select %25, %29, %31 : vector<4x16xi1>, vector<4x16xf32>
    %33 = arith.select %25, %30, %23 : vector<4x16xi1>, vector<4x16xf32>
    %cst_15 = arith.constant 4.216320e-02 : f32
    %34 = vector.broadcast %cst_15 : f32 to vector<4x16xf32>
    %35 = arith.mulf %34, %32 : vector<4x16xf32>
    %cst_16 = arith.constant 0.024181312 : f32
    %36 = vector.broadcast %cst_16 : f32 to vector<4x16xf32>
    %37 = arith.addf %35, %36 : vector<4x16xf32>
    %38 = arith.mulf %37, %32 : vector<4x16xf32>
    %cst_17 = arith.constant 0.0454700254 : f32
    %39 = vector.broadcast %cst_17 : f32 to vector<4x16xf32>
    %40 = arith.addf %38, %39 : vector<4x16xf32>
    %41 = arith.mulf %40, %32 : vector<4x16xf32>
    %cst_18 = arith.constant 0.0749530047 : f32
    %42 = vector.broadcast %cst_18 : f32 to vector<4x16xf32>
    %43 = arith.addf %41, %42 : vector<4x16xf32>
    %44 = arith.mulf %43, %32 : vector<4x16xf32>
    %cst_19 = arith.constant 0.166667521 : f32
    %45 = vector.broadcast %cst_19 : f32 to vector<4x16xf32>
    %46 = arith.addf %44, %45 : vector<4x16xf32>
    %47 = arith.mulf %46, %32 : vector<4x16xf32>
    %48 = arith.mulf %47, %33 : vector<4x16xf32>
    %49 = arith.addf %48, %33 : vector<4x16xf32>
    %cst_20 = arith.constant 2.000000e+00 : f32
    %50 = vector.broadcast %cst_20 : f32 to vector<4x16xf32>
    %51 = arith.mulf %50, %49 : vector<4x16xf32>
    %cst_21 = arith.constant 1.57079637 : f32
    %52 = vector.broadcast %cst_21 : f32 to vector<4x16xf32>
    %53 = arith.subf %52, %51 : vector<4x16xf32>
    %54 = arith.select %25, %53, %49 : vector<4x16xi1>, vector<4x16xf32>
    %55 = arith.mulf %54, %54 : vector<4x16xf32>
    %cst_22 = arith.constant 2.000000e+00 : f32
    %56 = vector.broadcast %cst_22 : f32 to vector<4x16xf32>
    %57 = arith.mulf %56, %55 : vector<4x16xf32>
    %58 = tpu.iota {dimensions = array<i32: 1>} : vector<1x16xi32>
    %c1_i32 = arith.constant 1 : i32
    %59 = arith.muli %arg0, %c1_i32 : i32
    %60 = arith.addi %59, %arg1 : i32
    %c16_i32 = arith.constant 16 : i32
    %61 = arith.muli %60, %c16_i32 : i32
    %62 = vector.broadcast %61 : i32 to vector<1x16xi32>
    %63 = arith.addi %62, %58 : vector<1x16xi32>
    %c8_i32 = arith.constant 8 : i32
    %64 = vector.broadcast %c8_i32 : i32 to vector<1x16xi32>
    %65 = arith.cmpi slt, %63, %64 : vector<1x16xi32>
    %cst_23 = arith.constant 0.000000e+00 : f32
    %66 = vector.shape_cast %65 : vector<1x16xi1> to vector<1x16xi1>
    %67 = vector.broadcast %66 : vector<1x16xi1> to vector<4x16xi1>
    %68 = vector.broadcast %cst_23 : f32 to vector<4x16xf32>
    %69 = arith.select %67, %57, %68 : vector<4x16xi1>, vector<4x16xf32>
    %c0_24 = arith.constant 0 : index
    %c0_25 = arith.constant 0 : index
    %70 = vector.load %arg5[%c0_24, %c0_25] : memref<4x16xf32, #tpu.memory_space<vmem>>, vector<4x16xf32>
    %71 = arith.addf %70, %69 : vector<4x16xf32>
    %c0_26 = arith.constant 0 : index
    %c0_27 = arith.constant 0 : index
    %72 = vector.load %arg5[%c0_26, %c0_27] : memref<4x16xf32, #tpu.memory_space<vmem>>, vector<4x16xf32>
    tpu.vector_store %arg5[%c0_26, %c0_27], %71 {strides = array<i32>} : memref<4x16xf32, #tpu.memory_space<vmem>>, vector<4x16xf32>,
    %c0_i32_28 = arith.constant 0 : i32
    %73 = arith.cmpi eq, %arg1, %c0_i32_28 : i32
    %74 = arith.extui %73 : i1 to i32
    %c0_i32_29 = arith.constant 0 : i32
    %75 = arith.cmpi ne, %74, %c0_i32_29 : i32
    scf.if %75 {
      %c0_30 = arith.constant 0 : index
      %c0_31 = arith.constant 0 : index
      %76 = vector.load %arg5[%c0_30, %c0_31] : memref<4x16xf32, #tpu.memory_space<vmem>>, vector<4x16xf32>
      %77 = vector.shape_cast %76 : vector<4x16xf32> to vector<1x4x16xf32>
      %cst_32 = arith.constant dense<0.000000e+00> : vector<1xf32>
      %78 = vector.multi_reduction <add>, %77, %cst_32 [1, 2] : vector<1x4x16xf32> to vector<1xf32>
      %79 = vector.shape_cast %78 : vector<1xf32> to vector<1x1x1xf32>
      %80 = vector.extract %79[0, 0, 0] : f32 from vector<1x1x1xf32>
      %81 = vector.broadcast %80 : f32 to vector<1x1xf32>
      %82 = vector.shape_cast %81 : vector<1x1xf32> to vector<1x1x1xf32>
      %c0_33 = arith.constant 0 : index
      %c0_34 = arith.constant 0 : index
      %c0_35 = arith.constant 0 : index
      %83 = vector.load %arg4[%c0_33, %c0_34, %c0_35] : memref<1x1x1xf32, #tpu.memory_space<vmem>>, vector<1x1x1xf32>
      tpu.vector_store %arg4[%c0_33, %c0_34, %c0_35], %82 {strides = array<i32>} : memref<1x1x1xf32, #tpu.memory_space<vmem>>, vector<1x1x1xf32>,
    } else {
    }
    return
  }
  func.func @transform_0(%arg0: i32, %arg1: i32) -> (i32, i32) {
    %c1_i32 = arith.constant 1 : i32
    %0 = arith.muli %arg0, %c1_i32 : i32
    %1 = arith.addi %0, %arg1 : i32
    %c0_i32 = arith.constant 0 : i32
    %c0_i32_0 = arith.constant 0 : i32
    return %1, %c0_i32 : i32, i32
  }
  func.func @transform_1(%arg0: i32, %arg1: i32) -> (i32, i32) {
    %c0_i32 = arith.constant 0 : i32
    %c0_i32_0 = arith.constant 0 : i32
    %c0_i32_1 = arith.constant 0 : i32
    return %c0_i32, %c0_i32_0 : i32, i32
  }
  func.func @transform_2(%arg0: i32, %arg1: i32) -> (i32, i32, i32) {
    %c0_i32 = arith.constant 0 : i32
    %c0_i32_0 = arith.constant 0 : i32
    %c0_i32_1 = arith.constant 0 : i32
    return %arg0, %c0_i32, %c0_i32_0 : i32, i32, i32
  }
}

</mosaic_0001>

<bundles_post_ra>
// kernel: tpu_custom_call.1
= control target key start
LH: loop header
LB: loop body
LE: loop exit
PB: predicated region body
PF: predicated region fallthrough
CT: control target
= control target key end

     0   :  { %7 = vsyncpa [#allocation4], 0  ;;  %s497_s0 = inlined_call_operand.hbm [shape: f32[16,32], index: 0, kind: input, shape index: {}]   ;;  %s498_s1 = inlined_call_operand.hbm [shape: f32[4,32], index: 1, kind: input, shape index: {}]   ;;  %s499_s2 = inlined_call_operand.hbm [shape: f32[1,1,1], index: 2, kind: output, shape index: {}]  }
   0x1   :  { %8 = vsyncpa [#allocation7], 0 }
   0x2   :  { %9 = vsyncpa [#allocation5], 0  ;;  %s431_s9 = smov [#allocation3]   ;;  %s359_s13 = scalar_lea.hbm %s497_s0, 256 }
   0x3   :  { %s19_s10 = sshll.u32 %s431_s9, 4  ;;  %p360_p0 = scmp.ne.s32.totalorder %s497_s0, %s359_s13  ;;  %s20_s10 = int_to_ptr.vmem [resolvable:$true] %s19_s10 }
   0x4   :  { %p363_p1 = scmp.lt.u32.totalorder %s359_s13, %s497_s0 }
   0x6   :  { %p365_p2 = pnand %p363_p1, %p360_p0 }
   0x8   :  { %368 = shalt.err (!%p365_p2)
}
   0x9   :  { %s369_s18 = scalar_lea.vmem %s20_s10, 256  ;;  %p374_p4 = scmp.lt.s32.totalorder %s20_s10, %s20_s10 }
   0xa   :  { %p370_p3 = scmp.ne.s32.totalorder %s20_s10, %s369_s18  ;;  %p375_p5 = scmp.lt.s32.totalorder %s369_s18, %s369_s18 }
   0xc   :  { %p376_p6 = por %p375_p5, %p374_p4 }
   0xe   :  { %p377_p7 = pnand %p376_p6, %p370_p3 }
  0x10   :  { %380 = shalt.err (!%p377_p7)
}
  0x11   :  { %s432_s19 = smov 128   ;;  %s433_s20 = smov 8  }
  0x12   :  { %25 = dma.hbm_to_vmem [thread:$0]  %s497_s0, 256, %s20_s10, [#allocation4], %s432_s19, %s432_s19, %s433_s20  }
  0x13   :  { %s434_s23 = smov [#allocation6]   ;;  %s381_s27 = scalar_lea.hbm %s498_s1, 64 }
  0x14   :  { %s32_s24 = sshll.u32 %s434_s23, 4  ;;  %p382_p8 = scmp.ne.s32.totalorder %s498_s1, %s381_s27  ;;  %s33_s24 = int_to_ptr.vmem [resolvable:$true] %s32_s24 }
  0x15   :  { %p385_p9 = scmp.lt.u32.totalorder %s381_s27, %s498_s1 }
  0x17   :  { %p387_p10 = pnand %p385_p9, %p382_p8 }
  0x19   :  { %390 = shalt.err (!%p387_p10)
}
  0x1a   :  { %s391_s4 = scalar_lea.vmem %s33_s24, 64  ;;  %p396_p12 = scmp.lt.s32.totalorder %s33_s24, %s33_s24 }
  0x1b   :  { %p392_p11 = scmp.ne.s32.totalorder %s33_s24, %s391_s4  ;;  %p397_p13 = scmp.lt.s32.totalorder %s391_s4, %s391_s4 }
  0x1d   :  { %p398_p0 = por %p397_p13, %p396_p12 }
  0x1f   :  { %p399_p1 = pnand %p398_p0, %p392_p11 }
  0x21   :  { %402 = shalt.err (!%p399_p1)
}
  0x22   :  { %35 = dma.hbm_to_vmem [thread:$0]  %s498_s1, 64, %s33_s24, [#allocation7]  }
  0x23   :  { %425 = dma.done.wait [#allocation4], 256  }
  0x24   :  { %426 = vsyncadd [#allocation4], 4294967040 }
  0x25   :  { %427 = dma.done.wait [#allocation7], 64  }
  0x26   :  { %428 = vsyncadd [#allocation7], 4294967232  ;;  %v435_v0 = vmov 0.0|0.0   ;;  %vm436_vm0 = vmmov 0   ;;  %v437_v1 = vmov 0.0   ;;  %vm54_vm1 = vcmask 261120  }
  0x27   :  { %334 = vmatprep.subr.bf16.mxu0 %v435_v0  ;;  %324 = vmatprep.mubr.msk.f32.mxu0 %vm436_vm0, %v437_v1  ;;  %v50_v2 = vld [vmem:[#allocation3] sm:$0xff]  ;;  %v51_v3 = vld [vmem:[#allocation3 + $0x8] sm:$0xff]  ;;  %vm336_vm2 = vmpackc.low %vm54_vm1, %vm54_vm1  ;;  %v438_v9 = vmov 1.0   ;;  %vm48_vm3 = vcmask 125952   ;;  %v216_v15 = vlaneseq  ;;  %s439_s1 = smov [#allocation8]   ;;  %vm290_vm10 = vcmask 0  }
  0x28   :  { %338 = vmatprep.subr.bf16.mxu1 %v435_v0  ;;  %331 = vmatprep.mubr.msk.f32.mxu1 %vm436_vm0, %v437_v1  ;;  %v52_v4 = vmul.f32 %v50_v2, %v50_v2  ;;  %v53_v5 = vmul.f32 %v51_v3, %v51_v3  ;;  %v339_v6 = vpack.c.bf16 %v51_v3, %v50_v2  ;;  %v136_v8 = vld [vmem:[#allocation6] sm:$0xf]  ;;  %s298_s6 = sshll.u32 %s439_s1, 4  ;;  %s299_s6 = int_to_ptr.vmem [resolvable:$true] %s298_s6 }
  0x29   :  { %49 = vst.msk [vmem:[#allocation2] sm:$0xf] %vm48_vm3, %v437_v1  ;;  %v217_v16 = vshrl.u32 %v216_v15, 7  ;;  %v262_v53 = vand.u32 127, %v216_v15  ;;  %s403_s8 = scalar_lea.vmem %s299_s6, 16  ;;  %s407_s9 = scalar_lea.vmem %s299_s6, 32 }
  0x2a   :  { %v335_v7 = vpack.c.bf16 %v53_v5, %v52_v4  ;;  %341 = vmatpush3.bf16.xpose.msk.msra.mxu1 %vm336_vm2, %v339_v6  ;;  %p404_p2 = scmp.ne.s32.totalorder %s299_s6, %s403_s8  ;;  %p408_p3 = scmp.lt.s32.totalorder %s299_s6, %s299_s6 }
  0x2b   :  { %v218_v17 = vsub.s32 0, %v217_v16  ;;  %vm267_vm9 = vcmp.lt.s32.totalorder %v262_v53, 8  ;;  %p409_p4 = scmp.lt.s32.totalorder %s407_s9, %s403_s8 }
  0x2c   :  { %337 = vmatpush3.bf16.xpose.msk.msra.mxu0 %vm336_vm2, %v335_v7 }
  0x2d   :  { %p410_p5 = por %p409_p4, %p408_p3 }
  0x2f   :  { %p411_p6 = pnand %p410_p5, %p404_p2 }
  0x30   :  { %v271_v57 = vld [vmem:[#allocation2] sm:$0xf] }
  0x31   :  { %332 = vmatmul.mubr.msk.f32.vlgmr.msra.gmra.mrb[0].mxu1 %vm54_vm1, %v136_v8 }
  0x33   :  { %325 = vmatmul.mubr.msk.f32.vlgmr.msra.gmra.mrb[0].mxu0 %vm54_vm1, %v438_v9 }
 0x104   :  { %v212_v10 = vpop.f32.mrb[0].mxu1 }
 0x105   :  { %v333_v11 = vpop.f32.mrb[1].mxu1 }
 0x106   :  { %v130_v12 = vpop.f32.mrb[0].mxu0 }
 0x107   :  { %v134_v13 = vmax.f32 %v130_v12, 1e-24  ;;  %v326_v14 = vpop.f32.mrb[1].mxu0 }
 0x109   :  { %353 = vrsqrt.f32 %v134_v13 }
 0x113   :  { %v354_v18 = vpop.eup %353 }
 0x114   :  { %v219_v19 = vrot.slane %v354_v18, %v218_v17 }
 0x116   :  { %v220_v20 = vmul.f32 %v219_v19, %v212_v10 }
 0x118   :  { %v221_v21 = vmul.f32 0.5, %v220_v20 }
 0x11a   :  { %v222_v22 = vsub.f32 0.5, %v221_v21 }
 0x11c   :  { %v223_v23 = vmax.f32 %v222_v22, 0.0 }
 0x11e   :  { %v224_v24 = vmin.f32 %v223_v23, 1.0 }
 0x120   :  { %355 = vrsqrt.f32 %v224_v24  ;;  %vm227_vm4 = vcmp.eq.f32.partialorder %v224_v24, inf  ;;  %v230_v27 = vand.u32 2147483648, %v224_v24  ;;  %vm229_vm5 = vcmp.eq.f32.partialorder %v224_v24, 0.0 }
 0x12a   :  { %v356_v25 = vpop.eup %355 }
 0x12b   :  { %v226_v26 = vmul.f32 %v356_v25, %v224_v24 }
 0x12d   :  { %v228_v28 = vsel %vm227_vm4, %v224_v24, %v226_v26 }
 0x12e   :  { %v231_v29 = vsel %vm229_vm5, %v230_v27, %v228_v28 }
 0x12f   :  { %v233_v30 = vsub.f32 1.0, %v231_v29  ;;  %v242_v32 = vmul.f32 %v231_v29, %v231_v29  ;;  %vm232_vm6 = vcmp.gt.f32.partialorder %v231_v29, 0.5 }
 0x131   :  { %v234_v31 = vmul.f32 0.5, %v233_v30 }
 0x133   :  { %357 = vrsqrt.f32 %v234_v31  ;;  %v243_v33 = vsel %vm232_vm6, %v234_v31, %v242_v32  ;;  %vm237_vm7 = vcmp.eq.f32.partialorder %v234_v31, inf  ;;  %v240_v43 = vand.u32 2147483648, %v234_v31 }
 0x134   :  { %v245_v34 = vmul.f32 0.0421632, %v243_v33  ;;  %vm239_vm8 = vcmp.eq.f32.partialorder %v234_v31, 0.0 }
 0x136   :  { %v246_v35 = vadd.f32 0.024181312, %v245_v34 }
 0x138   :  { %v247_v36 = vmul.f32 %v246_v35, %v243_v33 }
 0x13a   :  { %v248_v37 = vadd.f32 0.045470025, %v247_v36 }
 0x13c   :  { %v249_v39 = vmul.f32 %v248_v37, %v243_v33 }
 0x13d   :  { %v358_v38 = vpop.eup %357 }
 0x13e   :  { %v236_v40 = vmul.f32 %v358_v38, %v234_v31  ;;  %v250_v41 = vadd.f32 0.074953005, %v249_v39 }
 0x140   :  { %v238_v42 = vsel %vm237_vm7, %v234_v31, %v236_v40  ;;  %v251_v44 = vmul.f32 %v250_v41, %v243_v33 }
 0x141   :  { %v241_v45 = vsel %vm239_vm8, %v240_v43, %v238_v42 }
 0x142   :  { %v252_v46 = vadd.f32 0.16666752, %v251_v44  ;;  %v244_v48 = vsel %vm232_vm6, %v241_v45, %v231_v29 }
 0x144   :  { %v253_v47 = vmul.f32 %v252_v46, %v243_v33 }
 0x146   :  { %v254_v49 = vmul.f32 %v253_v47, %v244_v48 }
 0x148   :  { %v255_v50 = vadd.f32 %v254_v49, %v244_v48 }
 0x14a   :  { %v256_v51 = vmul.f32 2.0, %v255_v50 }
 0x14c   :  { %v257_v52 = vsub.f32 1.5707964, %v256_v51 }
 0x14e   :  { %v258_v54 = vsel %vm232_vm6, %v257_v52, %v255_v50 }
 0x14f   :  { %v259_v55 = vmul.f32 %v258_v54, %v258_v54 }
 0x151   :  { %v260_v56 = vmul.f32 2.0, %v259_v55 }
 0x153   :  { %v270_v58 = vsel %vm267_vm9, %v260_v56, 0.0 }
 0x154   :  { %v272_v59 = vadd.f32 %v271_v57, %v270_v58 }
 0x156   :  { %274 = vst.msk [vmem:[#allocation2] sm:$0xf] %vm48_vm3, %v272_v59 }
 0x15d   :  { %v278_v60 = vld [vmem:[#allocation2] sm:$0xf] }
 0x15e   :  { %v279_v61 = vsel %vm48_vm3, %v278_v60, 0.0 }
 0x15f   :  { %280 = vadd.xlane.f32.xlu0 %v279_v61 }
 0x1ec   :  { %v281_v62 = vpop.xlane.xlu0 %280 }
 0x1ed   :  { %v282_v63 = vrot.slane %v281_v62, 4 }
 0x1ef   :  { %v283_v0 = vadd.f32 %v282_v63, %v281_v62 }
 0x1f1   :  { %v284_v1 = vrot.slane %v283_v0, 2 }
 0x1f3   :  { %v285_v2 = vadd.f32 %v284_v1, %v283_v0 }
 0x1f5   :  { %v286_v3 = vrot.slane %v285_v2, 1 }
 0x1f7   :  { %v287_v4 = vadd.f32 %v286_v3, %v285_v2 }
 0x1f9   :  { %342 = vpush %v287_v4 }
 0x22a   :  { %s343_s7 = spop %342 }
 0x22b   :  { %v289_v5 = vstv %s343_s7 }
 0x22c   :  { %291 = vst.msk [vmem:[#allocation8] sm:$0x1] %vm290_vm10, %v289_v5 }
 0x22d   :  { %414 = shalt.err (!%p411_p6)
}
 0x22e   :  { %s415_s12 = scalar_lea.hbm %s499_s2, 16 }
 0x22f   :  { %p416_p7 = scmp.ne.s32.totalorder %s499_s2, %s415_s12  ;;  %p419_p8 = scmp.lt.u32.totalorder %s415_s12, %s499_s2 }
 0x231   :  { %p421_p9 = pnand %p419_p8, %p416_p7 }
 0x233   :  { %424 = shalt.err (!%p421_p9)
}
 0x234   :  { %301 = dma.vmem_to_hbm [thread:$0]  %s299_s6, 16, %s499_s2, [#allocation5]  }
 0x235   :  { %429 = dma.done.wait [#allocation5], 16  }
 0x236   :  { %430 = vsyncadd [#allocation5], 4294967280 }
 0x237   :  { %305 = vsyncpa [#allocation4], 1 }
 0x238   :  { %306 = vsyncpa [#allocation7], 1 }
 0x239   :  { %307 = vsyncpa [#allocation5], 1 }

</bundles_post_ra>
